<compile_context>
chip_gen: v7x
topology: tpu7x:2x2x1
jax: 0.10.0
libtpu: 0.0.40
codegen_flags: <defaults>
</compile_context>

<pallas_src>
import functools

import jax
import jax.numpy as jnp
from jax.experimental import pallas as pl
from jax.experimental.pallas import tpu as pltpu
from jax.scipy.special import logsumexp

_MASK = 1.0e12  # same huge constant as the torch module


def _round_up(a, b):
    return ((a + b - 1) // b) * b


def _zlpr_kernel(x_ref, y_ref, out_ref, *, n_rows, tile_rows):
    """Per-row ZLPR loss for one row tile; padded tail rows are zeroed."""
    i = pl.program_id(0)

    x = x_ref[...].astype(jnp.float32)        # (T, C) logits
    y = y_ref[...].astype(jnp.float32)        # (T, C) 0/1 labels

    y_pred = (1.0 - 2.0 * y) * x
    y_neg = y_pred - y * _MASK                # positive classes -> ~-inf
    y_pos = y_pred - (1.0 - y) * _MASK        # negative classes -> ~-inf

    def _lse_with_extra(v, extra):
        # logsumexp over the class (lane) axis with one extra appended logit.
        m = jnp.maximum(jnp.max(v, axis=-1, keepdims=True), extra)          # (T, 1)
        s = jnp.sum(jnp.exp(v - m), axis=-1, keepdims=True) + jnp.exp(extra - m)
        return m + jnp.log(s)                                               # (T, 1)

    neg_loss = _lse_with_extra(y_neg, jnp.float32(0.5))
    pos_loss = _lse_with_extra(y_pos, jnp.float32(-0.5))
    loss = neg_loss + pos_loss                                              # (T, 1)

    # zero out padded tail rows so the wrapper can sum the whole output
    row = jax.lax.broadcasted_iota(jnp.int32, loss.shape, 0) + i * tile_rows
    out_ref[...] = jnp.where(row < n_rows, loss, 0.0)


def multilabel_softmax_ce_loss(logits, labels, *, tile_rows=1024):
    """Mean ZLPR multi-label CE over logits/labels of shape (..., C)."""
    assert logits.shape == labels.shape, (logits.shape, labels.shape)
    C = logits.shape[-1]
    x = logits.reshape(-1, C)
    y = labels.reshape(-1, C)
    N = x.shape[0]

    # dtype-aware sublane multiple (f32: 8, bf16: 16, int8: 32) so packed
    # dtypes keep full, unmasked vreg layouts.
    min_item = int(min(x.dtype.itemsize, y.dtype.itemsize))
    row_mult = max(8, 32 // min_item)

    # Tile budget: 2 inputs x 2 pipeline buffers <= ~8 MiB. Safe on v5e's
    # 16 MiB scoped-VMEM default and comfortably under v7x's 64 MiB VMEM.
    bytes_per_row = (x.dtype.itemsize + y.dtype.itemsize) * C
    vmem_budget = 8 * 1024 * 1024
    max_rows = max(row_mult,
                   (vmem_budget // (2 * bytes_per_row)) // row_mult * row_mult)
    tr = max(row_mult, min(tile_rows, max_rows) // row_mult * row_mult)
    tr = min(tr, _round_up(N, row_mult))

    # pad to a tile multiple (kernel masks the tail rows)
    n_pad = _round_up(N, tr)
    if n_pad != N:
        x = jnp.pad(x, ((0, n_pad - N), (0, 0)))
        y = jnp.pad(y, ((0, n_pad - N), (0, 0)))

    grid = (n_pad // tr,)
    kernel = functools.partial(_zlpr_kernel, n_rows=N, tile_rows=tr)

    per_row = pl.pallas_call(
        kernel,
        out_shape=jax.ShapeDtypeStruct((n_pad, 1), jnp.float32),
        grid_spec=pltpu.PrefetchScalarGridSpec(
            num_scalar_prefetch=0,
            grid=grid,
            in_specs=[
                pl.BlockSpec((tr, C), lambda i: (i, 0)),
                pl.BlockSpec((tr, C), lambda i: (i, 0)),
            ],
            out_specs=pl.BlockSpec((tr, 1), lambda i: (i, 0)),
        ),
        compiler_params=pltpu.CompilerParams(
            # row tiles are independent (no cross-step accumulation) ->
            # shardable across v7x's two TensorCores
            dimension_semantics=("parallel",),
        ),
    )(x, y)

    return jnp.sum(per_row) / jnp.float32(N)


def _reference(logits, labels):
    x = logits.astype(jnp.float32)
    y = labels.astype(jnp.float32)
    y_pred = (1.0 - 2.0 * y) * x
    y_neg = y_pred - y * _MASK
    y_pos = y_pred - (1.0 - y) * _MASK
    zeros_neg = jnp.zeros_like(y_pred[..., :1]) + 0.5
    zeros_pos = jnp.zeros_like(y_pred[..., :1]) - 0.5
    y_neg = jnp.concatenate([y_neg, zeros_neg], axis=-1)
    y_pos = jnp.concatenate([y_pos, zeros_pos], axis=-1)
    neg_loss = logsumexp(y_neg, axis=-1)
    pos_loss = logsumexp(y_pos, axis=-1)
    return jnp.mean(neg_loss + pos_loss)


if __name__ == "__main__":
    key = jax.random.PRNGKey(0)
    k1, k2 = jax.random.split(key)

    # small demo shapes; non-multiple-of-8 batch exercises padding + masking
    N, C = 10, 128
    logits = jax.random.normal(k1, (N, C), dtype=jnp.float32) * 2.0
    # labels are 0/1 -> bf16 is lossless and halves that HBM stream
    labels = (jax.random.uniform(k2, (N, C)) > 0.8).astype(jnp.bfloat16)

    loss = jax.block_until_ready(multilabel_softmax_ce_loss(logits, labels))
    ref = jax.block_until_ready(_reference(logits, labels))

    assert jnp.allclose(loss, ref, rtol=1e-5, atol=1e-5), (loss, ref)
    print("KERNEL_OK")
</pallas_src>

<mosaic_0001>
module attributes {stable_mosaic.version = 11 : i64} {
  func.func @_zlpr_kernel(%arg0: i32, %arg1: memref<16x128xf32, #tpu.memory_space<vmem>>, %arg2: memref<16x128xbf16, #tpu.memory_space<vmem>>, %arg3: memref<16x1xf32, #tpu.memory_space<vmem>>) attributes {dimension_semantics = [#tpu.dimension_semantics<parallel>], iteration_bounds = array<i64: 1>, scalar_prefetch = 0 : i64, scratch_operands = 0 : i64, tpu.core_type = #tpu.core_type<tc>, window_params = [{transform_indices = @transform_0, window_bounds = array<i64: 16, 128>}, {transform_indices = @transform_1, window_bounds = array<i64: 16, 128>}, {transform_indices = @transform_2, window_bounds = array<i64: 16, 1>}]} {
    %c0 = arith.constant 0 : index
    %c0_0 = arith.constant 0 : index
    %0 = vector.load %arg1[%c0, %c0_0] : memref<16x128xf32, #tpu.memory_space<vmem>>, vector<16x128xf32>
    %c0_1 = arith.constant 0 : index
    %c0_2 = arith.constant 0 : index
    %1 = vector.load %arg2[%c0_1, %c0_2] : memref<16x128xbf16, #tpu.memory_space<vmem>>, vector<16x128xbf16>
    %2 = arith.extf %1 : vector<16x128xbf16> to vector<16x128xf32>
    %cst = arith.constant 2.000000e+00 : f32
    %3 = vector.broadcast %cst : f32 to vector<16x128xf32>
    %4 = arith.mulf %3, %2 : vector<16x128xf32>
    %cst_3 = arith.constant 1.000000e+00 : f32
    %5 = vector.broadcast %cst_3 : f32 to vector<16x128xf32>
    %6 = arith.subf %5, %4 : vector<16x128xf32>
    %7 = arith.mulf %6, %0 : vector<16x128xf32>
    %cst_4 = arith.constant 9.99999995E+11 : f32
    %8 = vector.broadcast %cst_4 : f32 to vector<16x128xf32>
    %9 = arith.mulf %2, %8 : vector<16x128xf32>
    %10 = arith.subf %7, %9 : vector<16x128xf32>
    %cst_5 = arith.constant 1.000000e+00 : f32
    %11 = vector.broadcast %cst_5 : f32 to vector<16x128xf32>
    %12 = arith.subf %11, %2 : vector<16x128xf32>
    %cst_6 = arith.constant 9.99999995E+11 : f32
    %13 = vector.broadcast %cst_6 : f32 to vector<16x128xf32>
    %14 = arith.mulf %12, %13 : vector<16x128xf32>
    %15 = arith.subf %7, %14 : vector<16x128xf32>
    %cst_7 = arith.constant dense<0xFF800000> : vector<16xf32>
    %16 = vector.multi_reduction <maximumf>, %10, %cst_7 [1] : vector<16x128xf32> to vector<16xf32>
    %17 = vector.shape_cast %16 : vector<16xf32> to vector<16x1xf32>
    %cst_8 = arith.constant 5.000000e-01 : f32
    %18 = vector.broadcast %cst_8 : f32 to vector<16x1xf32>
    %19 = arith.maximumf %17, %18 : vector<16x1xf32>
    %20 = vector.broadcast %19 : vector<16x1xf32> to vector<16x128xf32>
    %21 = arith.subf %10, %20 : vector<16x128xf32>
    %22 = math.exp %21 : vector<16x128xf32>
    %cst_9 = arith.constant dense<0.000000e+00> : vector<16xf32>
    %23 = vector.multi_reduction <add>, %22, %cst_9 [1] : vector<16x128xf32> to vector<16xf32>
    %24 = vector.shape_cast %23 : vector<16xf32> to vector<16x1xf32>
    %cst_10 = arith.constant 5.000000e-01 : f32
    %25 = vector.broadcast %cst_10 : f32 to vector<16x1xf32>
    %26 = arith.subf %25, %19 : vector<16x1xf32>
    %27 = math.exp %26 : vector<16x1xf32>
    %28 = arith.addf %24, %27 : vector<16x1xf32>
    %29 = math.log %28 : vector<16x1xf32>
    %30 = arith.addf %19, %29 : vector<16x1xf32>
    %cst_11 = arith.constant dense<0xFF800000> : vector<16xf32>
    %31 = vector.multi_reduction <maximumf>, %15, %cst_11 [1] : vector<16x128xf32> to vector<16xf32>
    %32 = vector.shape_cast %31 : vector<16xf32> to vector<16x1xf32>
    %cst_12 = arith.constant -5.000000e-01 : f32
    %33 = vector.broadcast %cst_12 : f32 to vector<16x1xf32>
    %34 = arith.maximumf %32, %33 : vector<16x1xf32>
    %35 = vector.broadcast %34 : vector<16x1xf32> to vector<16x128xf32>
    %36 = arith.subf %15, %35 : vector<16x128xf32>
    %37 = math.exp %36 : vector<16x128xf32>
    %cst_13 = arith.constant dense<0.000000e+00> : vector<16xf32>
    %38 = vector.multi_reduction <add>, %37, %cst_13 [1] : vector<16x128xf32> to vector<16xf32>
    %39 = vector.shape_cast %38 : vector<16xf32> to vector<16x1xf32>
    %cst_14 = arith.constant -5.000000e-01 : f32
    %40 = vector.broadcast %cst_14 : f32 to vector<16x1xf32>
    %41 = arith.subf %40, %34 : vector<16x1xf32>
    %42 = math.exp %41 : vector<16x1xf32>
    %43 = arith.addf %39, %42 : vector<16x1xf32>
    %44 = math.log %43 : vector<16x1xf32>
    %45 = arith.addf %34, %44 : vector<16x1xf32>
    %46 = arith.addf %30, %45 : vector<16x1xf32>
    %47 = tpu.iota {dimensions = array<i32: 0>} : vector<16x1xi32>
    %c16_i32 = arith.constant 16 : i32
    %48 = arith.muli %arg0, %c16_i32 : i32
    %49 = vector.broadcast %48 : i32 to vector<16x1xi32>
    %50 = arith.addi %47, %49 : vector<16x1xi32>
    %c10_i32 = arith.constant 10 : i32
    %51 = vector.broadcast %c10_i32 : i32 to vector<16x1xi32>
    %52 = arith.cmpi slt, %50, %51 : vector<16x1xi32>
    %cst_15 = arith.constant 0.000000e+00 : f32
    %53 = vector.broadcast %cst_15 : f32 to vector<16x1xf32>
    %54 = arith.select %52, %46, %53 : vector<16x1xi1>, vector<16x1xf32>
    %c0_16 = arith.constant 0 : index
    %c0_17 = arith.constant 0 : index
    %55 = vector.load %arg3[%c0_16, %c0_17] : memref<16x1xf32, #tpu.memory_space<vmem>>, vector<16x1xf32>
    tpu.vector_store %arg3[%c0_16, %c0_17], %54 {strides = array<i32>} : memref<16x1xf32, #tpu.memory_space<vmem>>, vector<16x1xf32>,
    return
  }
  func.func @transform_0(%arg0: i32) -> (i32, i32) {
    %c0_i32 = arith.constant 0 : i32
    %c0_i32_0 = arith.constant 0 : i32
    return %arg0, %c0_i32 : i32, i32
  }
  func.func @transform_1(%arg0: i32) -> (i32, i32) {
    %c0_i32 = arith.constant 0 : i32
    %c0_i32_0 = arith.constant 0 : i32
    return %arg0, %c0_i32 : i32, i32
  }
  func.func @transform_2(%arg0: i32) -> (i32, i32) {
    %c0_i32 = arith.constant 0 : i32
    %c0_i32_0 = arith.constant 0 : i32
    return %arg0, %c0_i32 : i32, i32
  }
}

</mosaic_0001>

<bundles_post_ra>
// kernel: tpu_custom_call.1
= control target key start
LH: loop header
LB: loop body
LE: loop exit
PB: predicated region body
PF: predicated region fallthrough
CT: control target
= control target key end

     0   :  { %7 = vsyncpa [#allocation3], 0  ;;  %s291_s0 = inlined_call_operand.hbm [shape: f32[16,128], index: 0, kind: input, shape index: {}]   ;;  %s292_s1 = inlined_call_operand.hbm [shape: bf16[16,128], index: 1, kind: input, shape index: {}]   ;;  %s293_s2 = inlined_call_operand.vmem [shape: f32[16,1], index: 2, kind: output, shape index: {}]  }
   0x1   :  { %8 = vsyncpa [#allocation5], 0  ;;  %s225_s9 = smov [#allocation2]   ;;  %s177_s13 = scalar_lea.hbm %s291_s0, 256 }
   0x2   :  { %s14_s10 = sshll.u32 %s225_s9, 4  ;;  %p178_p0 = scmp.ne.s32.totalorder %s291_s0, %s177_s13  ;;  %s15_s10 = int_to_ptr.vmem [resolvable:$true] %s14_s10 }
   0x3   :  { %p181_p1 = scmp.lt.u32.totalorder %s177_s13, %s291_s0 }
   0x5   :  { %p183_p2 = pnand %p181_p1, %p178_p0 }
   0x7   :  { %186 = shalt.err (!%p183_p2)
}
   0x8   :  { %s187_s18 = scalar_lea.vmem %s15_s10, 256  ;;  %p192_p4 = scmp.lt.s32.totalorder %s15_s10, %s15_s10 }
   0x9   :  { %p188_p3 = scmp.ne.s32.totalorder %s15_s10, %s187_s18  ;;  %p193_p5 = scmp.lt.s32.totalorder %s187_s18, %s187_s18 }
   0xb   :  { %p194_p6 = por %p193_p5, %p192_p4 }
   0xd   :  { %p195_p7 = pnand %p194_p6, %p188_p3 }
   0xf   :  { %198 = shalt.err (!%p195_p7)
}
  0x10   :  { %s226_s19 = smov 128   ;;  %s227_s20 = smov 8  }
  0x11   :  { %20 = dma.hbm_to_vmem [thread:$0]  %s291_s0, 256, %s15_s10, [#allocation3], %s226_s19, %s226_s19, %s227_s20  }
  0x12   :  { %s228_s23 = smov [#allocation4]   ;;  %s199_s27 = scalar_lea.hbm %s292_s1, 128 }
  0x13   :  { %s26_s24 = sshll.u32 %s228_s23, 4  ;;  %p200_p8 = scmp.ne.s32.totalorder %s292_s1, %s199_s27  ;;  %s27_s24 = int_to_ptr.vmem [resolvable:$true] %s26_s24 }
  0x14   :  { %p203_p9 = scmp.lt.u32.totalorder %s199_s27, %s292_s1 }
  0x16   :  { %p205_p10 = pnand %p203_p9, %p200_p8 }
  0x18   :  { %208 = shalt.err (!%p205_p10)
}
  0x19   :  { %s209_s4 = scalar_lea.vmem %s27_s24, 128  ;;  %p214_p12 = scmp.lt.s32.totalorder %s27_s24, %s27_s24 }
  0x1a   :  { %p210_p11 = scmp.ne.s32.totalorder %s27_s24, %s209_s4  ;;  %p215_p13 = scmp.lt.s32.totalorder %s209_s4, %s209_s4 }
  0x1c   :  { %p216_p0 = por %p215_p13, %p214_p12 }
  0x1e   :  { %p217_p1 = pnand %p216_p0, %p210_p11 }
  0x20   :  { %220 = shalt.err (!%p217_p1)
}
  0x21   :  { %s229_s0 = smov 64   ;;  %s230_s5 = smov 4  }
  0x22   :  { %32 = dma.hbm_to_vmem [thread:$0]  %s292_s1, 128, %s27_s24, [#allocation5], %s229_s0, %s229_s0, %s230_s5  }
  0x23   :  { %221 = dma.done.wait [#allocation3], 256  }
  0x24   :  { %222 = vsyncadd [#allocation3], 4294967040 }
  0x25   :  { %223 = dma.done.wait [#allocation5], 128  }
  0x26   :  { %224 = vsyncadd [#allocation5], 4294967168  ;;  %v144_v0 = vld [vmem:[#allocation4] sm:$0xff]   ;;  %v40_v6 = vld [vmem:[#allocation2 + $0x8] sm:$0xff]  ;;  %v123_v61 = vlaneseq  ;;  %vm134_vm1 = vcmask 7168  }
  0x27   :  { %v146_v1 = vunpack.c.h.bf16 %v144_v0  ;;  %v145_v2 = vunpack.c.l.bf16 %v144_v0  ;;  %v39_v7 = vld [vmem:[#allocation2] sm:$0xff] }
  0x28   :  { %v124_v63 = vshrl.u32 %v123_v61, 7 }
  0x29   :  { %v46_v3 = vmul.f32 2.0, %v146_v1  ;;  %v56_v4 = vsub.f32 1.0, %v146_v1  ;;  %v45_v5 = vmul.f32 2.0, %v145_v2  ;;  %v55_v8 = vsub.f32 1.0, %v145_v2 }
  0x2a   :  { %v52_v10 = vmul.f32 1e+12, %v146_v1  ;;  %v51_v12 = vmul.f32 1e+12, %v145_v2 }
  0x2b   :  { %v48_v9 = vsub.f32 1.0, %v46_v3  ;;  %v47_v11 = vsub.f32 1.0, %v45_v5  ;;  %v58_v14 = vmul.f32 1e+12, %v56_v4  ;;  %v57_v16 = vmul.f32 1e+12, %v55_v8 }
  0x2c   :  { %v125_v3 = vadd.s32 8, %v124_v63 }
  0x2d   :  { %v50_v13 = vmul.f32 %v48_v9, %v40_v6  ;;  %v49_v15 = vmul.f32 %v47_v11, %v39_v7 }
  0x2e   :  { %vm131_vm0 = vcmp.lt.s32.totalorder %v125_v3, 10 }
  0x2f   :  { %v54_v17 = vsub.f32 %v50_v13, %v52_v10  ;;  %v53_v18 = vsub.f32 %v49_v15, %v51_v12  ;;  %v60_v19 = vsub.f32 %v50_v13, %v58_v14  ;;  %v59_v20 = vsub.f32 %v49_v15, %v57_v16 }
  0x31   :  { %63 = vmax.xlane.f32.xlu0 %v54_v17  ;;  %61 = vmax.xlane.f32.xlu1 %v53_v18 }
  0x35   :  { %93 = vmax.xlane.f32.xlu0 %v60_v19  ;;  %91 = vmax.xlane.f32.xlu1 %v59_v20 }
  0xbe   :  { %v64_v21 = vpop.xlane.xlu0 %63  ;;  %v62_v22 = vpop.xlane.xlu1 %61 }
  0xbf   :  { %v270_v23 = vmax.f32 %v64_v21, 0.5  ;;  %v272_v24 = vmax.f32 %v62_v22, 0.5 }
  0xc1   :  { %v68_v25 = vsub.f32 %v54_v17, %v270_v23  ;;  %v67_v26 = vsub.f32 %v53_v18, %v272_v24  ;;  %v78_v41 = vsub.f32 0.5, %v270_v23  ;;  %v77_v42 = vsub.f32 0.5, %v272_v24 }
  0xc2   :  { %v94_v27 = vpop.xlane.xlu0 %93  ;;  %v92_v28 = vpop.xlane.xlu1 %91 }
  0xc3   :  { %v71_v29 = vmul.f32 1.442695, %v68_v25  ;;  %v96_v30 = vmax.f32 %v94_v27, -0.5  ;;  %v276_v31 = vmax.f32 %v92_v28, -0.5  ;;  %v69_v32 = vmul.f32 1.442695, %v67_v26 }
  0xc4   :  { %v81_v43 = vmul.f32 1.442695, %v78_v41  ;;  %v79_v45 = vmul.f32 1.442695, %v77_v42 }
  0xc5   :  { %153 = vpow2.f32 %v71_v29  ;;  %v98_v33 = vsub.f32 %v60_v19, %v96_v30  ;;  %v97_v34 = vsub.f32 %v59_v20, %v276_v31  ;;  %v108_v44 = vsub.f32 -0.5, %v96_v30 }
  0xc6   :  { %155 = vpow2.f32 %v69_v32  ;;  %v107_v47 = vsub.f32 -0.5, %v276_v31 }
  0xc7   :  { %v101_v35 = vmul.f32 1.442695, %v98_v33  ;;  %v99_v36 = vmul.f32 1.442695, %v97_v34  ;;  %v111_v46 = vmul.f32 1.442695, %v108_v44 }
  0xc8   :  { %v109_v48 = vmul.f32 1.442695, %v107_v47 }
  0xc9   :  { %157 = vpow2.f32 %v101_v35 }
  0xca   :  { %159 = vpow2.f32 %v99_v36 }
  0xcb   :  { %161 = vpow2.f32 %v81_v43 }
  0xcc   :  { %163 = vpow2.f32 %v79_v45 }
  0xcd   :  { %165 = vpow2.f32 %v111_v46 }
  0xce   :  { %167 = vpow2.f32 %v109_v48 }
  0xcf   :  { %v154_v37 = vpop.eup %153 }
  0xd0   :  { %75 = vadd.xlane.f32.xlu0 %v154_v37  ;;  %v156_v38 = vpop.eup %155 }
  0xd3   :  { %v158_v39 = vpop.eup %157 }
  0xd4   :  { %105 = vadd.xlane.f32.xlu1 %v158_v39  ;;  %73 = vadd.xlane.f32.xlu0 %v156_v38  ;;  %v160_v40 = vpop.eup %159 }
  0xd5   :  { %v162_v49 = vpop.eup %161 }
  0xd6   :  { %v164_v52 = vpop.eup %163 }
  0xd7   :  { %v166_v53 = vpop.eup %165 }
  0xd8   :  { %103 = vadd.xlane.f32.xlu1 %v160_v40  ;;  %v168_v58 = vpop.eup %167 }
 0x15d   :  { %v76_v50 = vpop.xlane.xlu0 %75 }
 0x15e   :  { %v84_v51 = vadd.f32 %v162_v49, %v76_v50 }
 0x160   :  { %169 = vlog2.f32 %v84_v51 }
 0x161   :  { %v74_v54 = vpop.xlane.xlu0 %73  ;;  %v106_v55 = vpop.xlane.xlu1 %105 }
 0x162   :  { %v83_v56 = vadd.f32 %v164_v52, %v74_v54  ;;  %v114_v57 = vadd.f32 %v166_v53, %v106_v55 }
 0x164   :  { %171 = vlog2.f32 %v83_v56 }
 0x165   :  { %173 = vlog2.f32 %v114_v57  ;;  %v104_v59 = vpop.xlane.xlu1 %103 }
 0x166   :  { %v113_v60 = vadd.f32 %v168_v58, %v104_v59 }
 0x168   :  { %175 = vlog2.f32 %v113_v60 }
 0x16a   :  { %v170_v62 = vpop.eup %169 }
 0x16b   :  { %v88_v1 = vmul.f32 0.6931472, %v170_v62 }
 0x16d   :  { %v90_v7 = vadd.f32 %v88_v1, %v270_v23 }
 0x16e   :  { %v172_v0 = vpop.eup %171 }
 0x16f   :  { %v174_v2 = vpop.eup %173  ;;  %v86_v5 = vmul.f32 0.6931472, %v172_v0 }
 0x170   :  { %v118_v4 = vmul.f32 0.6931472, %v174_v2 }
 0x171   :  { %v89_v11 = vadd.f32 %v86_v5, %v272_v24 }
 0x172   :  { %v176_v6 = vpop.eup %175  ;;  %v120_v8 = vadd.f32 %v118_v4, %v96_v30 }
 0x173   :  { %v116_v9 = vmul.f32 0.6931472, %v176_v6 }
 0x174   :  { %v122_v10 = vadd.f32 %v120_v8, %v90_v7 }
 0x175   :  { %v119_v12 = vadd.f32 %v116_v9, %v276_v31 }
 0x176   :  { %v133_v13 = vsel %vm131_vm0, %v122_v10, 0.0 }
 0x177   :  { %136 = vst.msk [vmem:[%s293_s2 + $0x8] sm:$0xff] %vm134_vm1, %v133_v13  ;;  %v121_v14 = vadd.f32 %v119_v12, %v89_v11 }
 0x179   :  { %135 = vst.msk [vmem:[%s293_s2] sm:$0xff] %vm134_vm1, %v121_v14 }
 0x17a   :  { %141 = vsyncpa [#allocation3], 1 }
 0x17b   :  { %142 = vsyncpa [#allocation5], 1 }

</bundles_post_ra>
